<compile_context>
chip_gen: v7x
topology: tpu7x:2x2x1
jax: 0.10.0
libtpu: 0.0.40
codegen_flags: <defaults>
</compile_context>

<pallas_src>
import functools

import jax
import jax.numpy as jnp
from jax.experimental import pallas as pl
from jax.experimental.pallas import tpu as pltpu


def _round_up(x: int, m: int) -> int:
    return ((x + m - 1) // m) * m


def fp8_linear_kernel(scale_ref, x_ref, w_ref, b_ref, o_ref, acc_ref):
    """Grid = (M tiles, N tiles, K tiles); K (reduction) is the last, sequential axis.

    scale_ref : SMEM (1,)  f32   global quantization scale (127 / clamp(max|x|, 1e-6))
    x_ref     : VMEM (tm, tk) f32
    w_ref     : VMEM (tk, tn) f32   weight already transposed to (in, out)
    b_ref     : VMEM (1, tn)  f32
    o_ref     : VMEM (tm, tn) f32
    acc_ref   : VMEM (tm, tn) f32 scratch accumulator (resident across the K axis)
    """
    k = pl.program_id(2)

    @pl.when(k == 0)
    def _init():
        acc_ref[...] = jnp.zeros_like(acc_ref)

    scale = scale_ref[0]

    # Fake-fp8 quantization (symmetric int8 range), applied per input tile.
    # jnp.round == torch.round (round-half-to-even).
    x_q = jnp.clip(jnp.round(x_ref[...] * scale), -127.0, 127.0)

    # No transpose inside the kernel: w_ref is already (K, N).
    acc_ref[...] += jnp.dot(x_q, w_ref[...], preferred_element_type=jnp.float32)

    @pl.when(k == pl.num_programs(2) - 1)
    def _finalize():
        # Dequant folded into the epilogue: one divide over the (tm, tn) output tile
        # instead of over the whole (B, K) activation.  Output dtype already f32,
        # so no astype needed.
        o_ref[...] = acc_ref[...] / scale + b_ref[...]


@functools.partial(jax.jit, static_argnames=("tm", "tn", "tk"))
def fp8_linear(x, weight, bias, *, tm=128, tn=256, tk=256):
    """x: (B, in) f32, weight: (out, in) f32, bias: (out,) f32 -> (B, out) f32."""
    B, K = x.shape
    N, _ = weight.shape

    # ---- global amax / scale (must cover the full x) -------------------------------
    amax = jnp.max(jnp.abs(x))
    scale = (127.0 / jnp.maximum(amax, 1e-6)).reshape(1).astype(jnp.float32)

    # ---- layout prep in the wrapper (one-time XLA work, outside the kernel) --------
    w_t = weight.T                      # (K, N): kernel feeds the MXU without w.T
    bias2d = bias.reshape(1, N)

    # Clamp tiles to the (padded) problem and pad everything to tile multiples so the
    # kernel only ever sees (8, 128)-aligned, lane-dense blocks.
    tm = min(tm, _round_up(B, 8))
    tn = min(tn, _round_up(N, 128))
    tk = min(tk, _round_up(K, 128))
    Bp, Np, Kp = _round_up(B, tm), _round_up(N, tn), _round_up(K, tk)

    x_p = jnp.pad(x, ((0, Bp - B), (0, Kp - K)))          # zero pad: amax/quant safe
    w_p = jnp.pad(w_t, ((0, Kp - K), (0, Np - N)))        # zero pad: contributes 0
    b_p = jnp.pad(bias2d, ((0, 0), (0, Np - N)))

    grid = (Bp // tm, Np // tn, Kp // tk)

    out_padded = pl.pallas_call(
        fp8_linear_kernel,
        out_shape=jax.ShapeDtypeStruct((Bp, Np), jnp.float32),
        grid=grid,
        in_specs=[
            pl.BlockSpec(memory_space=pltpu.MemorySpace.SMEM),        # scale (1,)
            pl.BlockSpec((tm, tk), lambda i, j, k: (i, k)),           # x
            pl.BlockSpec((tk, tn), lambda i, j, k: (k, j)),           # w^T
            pl.BlockSpec((1, tn), lambda i, j, k: (0, j)),            # bias
        ],
        out_specs=pl.BlockSpec((tm, tn), lambda i, j, k: (i, j)),
        scratch_shapes=[pltpu.VMEM((tm, tn), jnp.float32)],
        compiler_params=pltpu.CompilerParams(
            dimension_semantics=("parallel", "parallel", "arbitrary"),
        ),
        cost_estimate=pl.CostEstimate(
            flops=2 * Bp * Kp * Np,
            transcendentals=0,
            bytes_accessed=4 * (Bp * Kp + Kp * Np + Np + Bp * Np),
        ),
    )(scale, x_p, w_p, b_p)

    return out_padded[:B, :N]


def reference_fp8_linear(x, weight, bias):
    amax = jnp.max(jnp.abs(x))
    scale = 127.0 / jnp.maximum(amax, 1e-6)
    x_q = jnp.clip(jnp.round(x * scale), -127.0, 127.0)
    x_dq = x_q / scale
    return x_dq @ weight.T + bias


if __name__ == "__main__":
    in_features, out_features, batch = 32, 16, 8

    key = jax.random.PRNGKey(0)
    kx, kw, kb = jax.random.split(key, 3)

    # Deterministic params, matching nn.Linear's default U(-1/sqrt(in), 1/sqrt(in)) init.
    bound = 1.0 / (in_features ** 0.5)
    weight = jax.random.uniform(kw, (out_features, in_features), jnp.float32,
                                minval=-bound, maxval=bound)
    bias = jax.random.uniform(kb, (out_features,), jnp.float32,
                              minval=-bound, maxval=bound)
    x = jax.random.normal(kx, (batch, in_features), jnp.float32)

    out = jax.block_until_ready(fp8_linear(x, weight, bias))
    ref = reference_fp8_linear(x, weight, bias)

    assert out.shape == (batch, out_features)
    assert jnp.allclose(out, ref, atol=1e-5, rtol=1e-5), float(jnp.max(jnp.abs(out - ref)))

    print("KERNEL_OK")
</pallas_src>

<mosaic_0001>
module attributes {stable_mosaic.version = 11 : i64} {
  func.func @fp8_linear_kernel(%arg0: i32, %arg1: i32, %arg2: i32, %arg3: memref<1xf32, #tpu.memory_space<smem>>, %arg4: memref<8x128xf32, #tpu.memory_space<vmem>>, %arg5: memref<128x128xf32, #tpu.memory_space<vmem>>, %arg6: memref<1x128xf32, #tpu.memory_space<vmem>>, %arg7: memref<8x128xf32, #tpu.memory_space<vmem>>, %arg8: memref<8x128xf32, #tpu.memory_space<vmem>>) attributes {dimension_semantics = [#tpu.dimension_semantics<parallel>, #tpu.dimension_semantics<parallel>, #tpu.dimension_semantics<arbitrary>], iteration_bounds = array<i64: 1, 1, 1>, scalar_prefetch = 0 : i64, scratch_operands = 1 : i64, tpu.core_type = #tpu.core_type<tc>, window_params = [{transform_indices = @transform_0, window_bounds = array<i64: 1>}, {transform_indices = @transform_1, window_bounds = array<i64: 8, 128>}, {transform_indices = @transform_2, window_bounds = array<i64: 128, 128>}, {transform_indices = @transform_3, window_bounds = array<i64: 1, 128>}, {transform_indices = @transform_4, window_bounds = array<i64: 8, 128>}]} {
    %c0_i32 = arith.constant 0 : i32
    %0 = arith.cmpi eq, %arg2, %c0_i32 : i32
    %1 = arith.extui %0 : i1 to i32
    %c0_i32_0 = arith.constant 0 : i32
    %2 = arith.cmpi ne, %1, %c0_i32_0 : i32
    scf.if %2 {
      %cst_13 = arith.constant 0.000000e+00 : f32
      %20 = vector.broadcast %cst_13 : f32 to vector<8x128xf32>
      %c0_14 = arith.constant 0 : index
      %c0_15 = arith.constant 0 : index
      %21 = vector.load %arg8[%c0_14, %c0_15] : memref<8x128xf32, #tpu.memory_space<vmem>>, vector<8x128xf32>
      tpu.vector_store %arg8[%c0_14, %c0_15], %20 {strides = array<i32>} : memref<8x128xf32, #tpu.memory_space<vmem>>, vector<8x128xf32>,
    } else {
    }
    %c0 = arith.constant 0 : index
    %3 = memref.load %arg3[%c0] : memref<1xf32, #tpu.memory_space<smem>>
    %c0_1 = arith.constant 0 : index
    %c0_2 = arith.constant 0 : index
    %4 = vector.load %arg4[%c0_1, %c0_2] : memref<8x128xf32, #tpu.memory_space<vmem>>, vector<8x128xf32>
    %5 = vector.broadcast %3 : f32 to vector<8x128xf32>
    %6 = arith.mulf %4, %5 : vector<8x128xf32>
    %7 = math.roundeven %6 : vector<8x128xf32>
    %cst = arith.constant -1.270000e+02 : f32
    %cst_3 = arith.constant 1.270000e+02 : f32
    %8 = vector.broadcast %cst : f32 to vector<8x128xf32>
    %9 = arith.maximumf %8, %7 : vector<8x128xf32>
    %10 = vector.broadcast %cst_3 : f32 to vector<8x128xf32>
    %11 = arith.minimumf %10, %9 : vector<8x128xf32>
    %c0_4 = arith.constant 0 : index
    %c0_5 = arith.constant 0 : index
    %12 = vector.load %arg8[%c0_4, %c0_5] : memref<8x128xf32, #tpu.memory_space<vmem>>, vector<8x128xf32>
    %c0_6 = arith.constant 0 : index
    %c0_7 = arith.constant 0 : index
    %13 = vector.load %arg5[%c0_6, %c0_7] : memref<128x128xf32, #tpu.memory_space<vmem>>, vector<128x128xf32>
    %cst_8 = arith.constant dense<0.000000e+00> : vector<8x128xf32>
    %14 = tpu.matmul %11, %13, %cst_8 {dimension_numbers = #tpu.dot_dimension_numbers<[1], [0], [0], [1], [0, 0, 1, 1], [], []>} : vector<8x128xf32>, vector<128x128xf32>, vector<8x128xf32> -> vector<8x128xf32>
    %15 = arith.addf %12, %14 : vector<8x128xf32>
    %c0_9 = arith.constant 0 : index
    %c0_10 = arith.constant 0 : index
    %16 = vector.load %arg8[%c0_9, %c0_10] : memref<8x128xf32, #tpu.memory_space<vmem>>, vector<8x128xf32>
    tpu.vector_store %arg8[%c0_9, %c0_10], %15 {strides = array<i32>} : memref<8x128xf32, #tpu.memory_space<vmem>>, vector<8x128xf32>,
    %c0_i32_11 = arith.constant 0 : i32
    %17 = arith.cmpi eq, %arg2, %c0_i32_11 : i32
    %18 = arith.extui %17 : i1 to i32
    %c0_i32_12 = arith.constant 0 : i32
    %19 = arith.cmpi ne, %18, %c0_i32_12 : i32
    scf.if %19 {
      %c0_13 = arith.constant 0 : index
      %c0_14 = arith.constant 0 : index
      %20 = vector.load %arg8[%c0_13, %c0_14] : memref<8x128xf32, #tpu.memory_space<vmem>>, vector<8x128xf32>
      %21 = vector.broadcast %3 : f32 to vector<8x128xf32>
      %22 = arith.divf %20, %21 : vector<8x128xf32>
      %c0_15 = arith.constant 0 : index
      %c0_16 = arith.constant 0 : index
      %23 = vector.load %arg6[%c0_15, %c0_16] : memref<1x128xf32, #tpu.memory_space<vmem>>, vector<1x128xf32>
      %24 = vector.broadcast %23 : vector<1x128xf32> to vector<8x128xf32>
      %25 = arith.addf %22, %24 : vector<8x128xf32>
      %c0_17 = arith.constant 0 : index
      %c0_18 = arith.constant 0 : index
      %26 = vector.load %arg7[%c0_17, %c0_18] : memref<8x128xf32, #tpu.memory_space<vmem>>, vector<8x128xf32>
      tpu.vector_store %arg7[%c0_17, %c0_18], %25 {strides = array<i32>} : memref<8x128xf32, #tpu.memory_space<vmem>>, vector<8x128xf32>,
    } else {
    }
    return
  }
  func.func @transform_0(%arg0: i32, %arg1: i32, %arg2: i32) -> i32 {
    %c0_i32 = arith.constant 0 : i32
    %c0_i32_0 = arith.constant 0 : i32
    return %c0_i32 : i32
  }
  func.func @transform_1(%arg0: i32, %arg1: i32, %arg2: i32) -> (i32, i32) {
    %c0_i32 = arith.constant 0 : i32
    return %arg0, %arg2 : i32, i32
  }
  func.func @transform_2(%arg0: i32, %arg1: i32, %arg2: i32) -> (i32, i32) {
    %c0_i32 = arith.constant 0 : i32
    return %arg2, %arg1 : i32, i32
  }
  func.func @transform_3(%arg0: i32, %arg1: i32, %arg2: i32) -> (i32, i32) {
    %c0_i32 = arith.constant 0 : i32
    %c0_i32_0 = arith.constant 0 : i32
    return %c0_i32, %arg1 : i32, i32
  }
  func.func @transform_4(%arg0: i32, %arg1: i32, %arg2: i32) -> (i32, i32) {
    %c0_i32 = arith.constant 0 : i32
    return %arg0, %arg1 : i32, i32
  }
}

</mosaic_0001>

<bundles_post_ra>
// kernel: fp8_linear.1
= control target key start
LH: loop header
LB: loop body
LE: loop exit
PB: predicated region body
PF: predicated region fallthrough
CT: control target
= control target key end

     0   :  { %v258_v3 = vmov 0.0|0.0   ;;  %vm259_vm0 = vmmov 0   ;;  %v260_v6 = vmov 0.0   ;;  %s356_s0 = inlined_call_operand.<no memory space> [shape: f32[1], index: 0, kind: input, shape index: {}]   ;;  %s357_s1 = inlined_call_operand.vmem [shape: f32[8,128], index: 1, kind: input, shape index: {}]   ;;  %s358_s2 = inlined_call_operand.vmem [shape: f32[128,128], index: 2, kind: input, shape index: {}]   ;;  %s359_s3 = inlined_call_operand.vmem [shape: f32[1,128], index: 3, kind: input, shape index: {}]   ;;  %s360_s4 = inlined_call_operand.hbm [shape: f32[8,128], index: 4, kind: output, shape index: {}]  }
   0x1   :  { %v32_v0 = vld [vmem:[%s358_s2] sm:$0xff]  ;;  %v33_v1 = vld [vmem:[%s358_s2 + $0x8] sm:$0xff]  ;;  %v34_v2 = vld [vmem:[%s358_s2 + $0x10] sm:$0xff]  ;;  %203 = vmatprep.subr.bf16.mxu0 %v258_v3  ;;  %200 = vmatprep.mubr.msk.f32.mxu0 %vm259_vm0, %v260_v6 }
   0x2   :  { %v204_v4 = vpack.c.bf16 %v33_v1, %v32_v0  ;;  %v35_v5 = vld [vmem:[%s358_s2 + $0x18] sm:$0xff]  ;;  %v36_v8 = vld [vmem:[%s358_s2 + $0x20] sm:$0xff]  ;;  %v37_v9 = vld [vmem:[%s358_s2 + $0x28] sm:$0xff] }
   0x3   :  { %v207_v7 = vpack.c.bf16 %v35_v5, %v34_v2 }
   0x4   :  { %205 = vmatpush3.bf16.msra.mxu0 %v204_v4 }
   0x5   :  { %206 = vmatprep.subr.bf16.mxu0 %v258_v3 }
   0x6   :  { %10 = vsyncpa [#allocation5], 0  ;;  %v210_v10 = vpack.c.bf16 %v37_v9, %v36_v8  ;;  %v38_v11 = vld [vmem:[%s358_s2 + $0x30] sm:$0xff]  ;;  %v39_v12 = vld [vmem:[%s358_s2 + $0x38] sm:$0xff]  ;;  %v26_v21 = vstv %s356_s0  ;;  %s261_s25 = smov [#allocation4]  }
   0x7   :  { %v213_v13 = vpack.c.bf16 %v39_v12, %v38_v11  ;;  %v40_v14 = vld [vmem:[%s358_s2 + $0x40] sm:$0xff]  ;;  %v41_v15 = vld [vmem:[%s358_s2 + $0x48] sm:$0xff]  ;;  %v42_v17 = vld [vmem:[%s358_s2 + $0x50] sm:$0xff]  ;;  %232 = vrcp.f32 %v26_v21  ;;  %s141_s26 = sshll.u32 %s261_s25, 4  ;;  %s142_s26 = int_to_ptr.vmem [resolvable:$true] %s141_s26 }
   0x8   :  { %208 = vmatpush3.bf16.msra.mxu0 %v207_v7  ;;  %v216_v16 = vpack.c.bf16 %v41_v15, %v40_v14  ;;  %v43_v18 = vld [vmem:[%s358_s2 + $0x58] sm:$0xff]  ;;  %v25_v20 = vld [vmem:[%s357_s1] sm:$0xff]  ;;  %v45_v23 = vld [vmem:[%s358_s2 + $0x68] sm:$0xff]  ;;  %p239_p1 = scmp.lt.s32.totalorder %s142_s26, %s142_s26 }
   0x9   :  { %209 = vmatprep.subr.bf16.mxu0 %v258_v3  ;;  %v219_v19 = vpack.c.bf16 %v43_v18, %v42_v17  ;;  %v44_v22 = vld [vmem:[%s358_s2 + $0x60] sm:$0xff]  ;;  %v27_v24 = vmul.f32 %v26_v21, %v25_v20  ;;  %v46_v26 = vld [vmem:[%s358_s2 + $0x70] sm:$0xff]  ;;  %v47_v27 = vld [vmem:[%s358_s2 + $0x78] sm:$0xff]  ;;  %s234_s2 = scalar_lea.vmem %s142_s26, 128 }
   0xa   :  { %v222_v25 = vpack.c.bf16 %v45_v23, %v44_v22  ;;  %v225_v29 = vpack.c.bf16 %v47_v27, %v46_v26  ;;  %v150_v33 = vld [vmem:[%s359_s3] ss:$0 sm:$0xff]  ;;  %p235_p0 = scmp.ne.s32.totalorder %s142_s26, %s234_s2  ;;  %p240_p2 = scmp.lt.s32.totalorder %s234_s2, %s234_s2 }
   0xb   :  { %v227_v28 = vround.rtne.f32 %v27_v24 }
   0xc   :  { %211 = vmatpush3.bf16.msra.mxu0 %v210_v10  ;;  %p241_p3 = por %p240_p2, %p239_p1 }
   0xd   :  { %212 = vmatprep.subr.bf16.mxu0 %v258_v3  ;;  %v149_v30 = vclamps-f32 %v227_v28, 127.0 }
   0xe   :  { %p242_p4 = pnand %p241_p3, %p235_p0 }
  0x10   :  { %214 = vmatpush3.bf16.msra.mxu0 %v213_v13 }
  0x11   :  { %215 = vmatprep.subr.bf16.mxu0 %v258_v3  ;;  %v233_v31 = vpop.eup %232 }
  0x14   :  { %217 = vmatpush3.bf16.msra.mxu0 %v216_v16 }
  0x15   :  { %218 = vmatprep.subr.bf16.mxu0 %v258_v3 }
  0x18   :  { %220 = vmatpush3.bf16.msra.mxu0 %v219_v19 }
  0x19   :  { %221 = vmatprep.subr.bf16.mxu0 %v258_v3 }
  0x1c   :  { %223 = vmatpush3.bf16.msra.mxu0 %v222_v25 }
  0x1d   :  { %224 = vmatprep.subr.bf16.mxu0 %v258_v3 }
  0x20   :  { %226 = vmatpush3.bf16.msra.mxu0 %v225_v29 }
  0x23   :  { %201 = vmatmul.mubr.f32.vlgmr.msra.gmra.mrb[0].mxu0 %v149_v30 }
  0xf6   :  { %v114_v32 = vpop.f32.mrb[0].mxu0 }
  0xf7   :  { %v125_v34 = vmul.f32 %v233_v31, %v114_v32  ;;  %v202_v35 = vpop.f32.mrb[1].mxu0 }
  0xf9   :  { %v133_v36 = vadd.f32 %v150_v33, %v125_v34 }
  0xfb   :  { %134 = vst [vmem:[#allocation4] sm:$0xff] %v133_v36 }
  0xfc   :  { %245 = shalt.err (!%p242_p4)
}
  0xfd   :  { %s246_s29 = scalar_lea.hbm %s360_s4, 128 }
  0xfe   :  { %p247_p5 = scmp.ne.s32.totalorder %s360_s4, %s246_s29  ;;  %p250_p6 = scmp.lt.u32.totalorder %s246_s29, %s360_s4 }
 0x100   :  { %p252_p7 = pnand %p250_p6, %p247_p5 }
 0x102   :  { %255 = shalt.err (!%p252_p7)
}
 0x103   :  { %144 = dma.vmem_to_hbm [thread:$0]  %s142_s26, 128, %s360_s4, [#allocation5]  }
 0x104   :  { %256 = dma.done.wait [#allocation5], 128  }
 0x105   :  { %257 = vsyncadd [#allocation5], 4294967168 }
 0x106   :  { %148 = vsyncpa [#allocation5], 1 }

</bundles_post_ra>
